<compile_context>
chip_gen: v7x
topology: tpu7x:2x2x1
jax: 0.10.0
libtpu: 0.0.40
codegen_flags: <defaults>
</compile_context>

<pallas_src>
import functools

import jax
import jax.numpy as jnp
from jax.experimental import pallas as pl
from jax.experimental.pallas import tpu as pltpu


def actor_kernel(x_ref, w1_ref, b1_ref, w2_ref, b2_ref, w3_ref, b3_ref, o_ref):
    """One batch tile: x is (TILE_B, D_in_pad) bf16; weights bf16, biases f32."""
    # fc1 + ReLU (f32 accumulate on the MXU, elementwise in f32 on the VPU)
    h = jnp.dot(x_ref[...], w1_ref[...], preferred_element_type=jnp.float32)
    h = jnp.maximum(h + b1_ref[...], 0.0)
    # fc2 + ReLU
    h = jnp.dot(h.astype(w2_ref.dtype), w2_ref[...],
                preferred_element_type=jnp.float32)
    h = jnp.maximum(h + b2_ref[...], 0.0)
    # fc3 + tanh (tanh on the EUP)
    h = jnp.dot(h.astype(w3_ref.dtype), w3_ref[...],
                preferred_element_type=jnp.float32)
    o_ref[...] = jnp.tanh(h + b3_ref[...]).astype(o_ref.dtype)


def _round_up(n, m):
    return ((n + m - 1) // m) * m


def _pad2(a, rows, cols):
    return jnp.pad(a, ((0, rows - a.shape[0]), (0, cols - a.shape[1])))


@functools.partial(jax.jit, static_argnames=("tile_b",))
def actor_forward(state, params, *, tile_b=256):
    """state: (B, D_in) float32. params: dict of (W, b) per layer, W is (in, out)."""
    w1, b1 = params["fc1"]
    w2, b2 = params["fc2"]
    w3, b3 = params["fc3"]

    B, d_in = state.shape
    h1 = w1.shape[1]
    h2 = w2.shape[1]
    d_out = w3.shape[1]

    compute_dtype = jnp.bfloat16  # MXU-native on v5e/v6e/v7x; f32 accumulation.

    # Lane-dense padding of all feature dims to multiples of 128 (exact: see header).
    d_in_p = _round_up(d_in, 128)
    h1_p = _round_up(h1, 128)
    h2_p = _round_up(h2, 128)
    d_out_p = _round_up(d_out, 128)

    # Batch tile: multiple of 8 (f32 sublane); cap at the (padded) batch size.
    tile_b = max(8, min(_round_up(tile_b, 8), _round_up(B, 8)))
    b_pad = _round_up(B, tile_b)

    x_p = _pad2(state, b_pad, d_in_p).astype(compute_dtype)
    w1_p = _pad2(w1, d_in_p, h1_p).astype(compute_dtype)
    w2_p = _pad2(w2, h1_p, h2_p).astype(compute_dtype)
    w3_p = _pad2(w3, h2_p, d_out_p).astype(compute_dtype)
    b1_p = _pad2(b1, 1, h1_p).astype(jnp.float32)
    b2_p = _pad2(b2, 1, h2_p).astype(jnp.float32)
    b3_p = _pad2(b3, 1, d_out_p).astype(jnp.float32)

    grid = (b_pad // tile_b,)

    def resident(shape):
        # Constant block index across the batch axis -> fetched once, stays in VMEM.
        return pl.BlockSpec(shape, lambda i: (0, 0))

    out_padded = pl.pallas_call(
        actor_kernel,
        out_shape=jax.ShapeDtypeStruct((b_pad, d_out_p), jnp.float32),
        grid_spec=pl.GridSpec(
            grid=grid,
            in_specs=[
                pl.BlockSpec((tile_b, d_in_p), lambda i: (i, 0)),  # state tile
                resident(w1_p.shape), resident(b1_p.shape),
                resident(w2_p.shape), resident(b2_p.shape),
                resident(w3_p.shape), resident(b3_p.shape),
            ],
            out_specs=pl.BlockSpec((tile_b, d_out_p), lambda i: (i, 0)),
        ),
        compiler_params=pltpu.CompilerParams(
            dimension_semantics=("parallel",),  # batch tiles are independent (2 TCs on v7x)
        ),
    )(x_p, w1_p, b1_p, w2_p, b2_p, w3_p, b3_p)

    return out_padded[:B, :d_out]


# ---------------------------------------------------------------------------
# Parameter init matching the PyTorch module (xavier_uniform_ weights,
# default nn.Linear bias init), stored as (in, out) for x @ W.
# ---------------------------------------------------------------------------
def xavier_uniform(key, fan_in, fan_out):
    bound = (6.0 / (fan_in + fan_out)) ** 0.5
    w = jax.random.uniform(key, (fan_out, fan_in), jnp.float32, -bound, bound)
    return w.T  # (in, out)


def linear_bias(key, fan_in, fan_out):
    bound = 1.0 / (fan_in ** 0.5)
    return jax.random.uniform(key, (1, fan_out), jnp.float32, -bound, bound)


def init_actor_params(key, layer_dims):
    keys = jax.random.split(key, 6)
    params = {}
    for i, name in enumerate(("l1", "l2", "l3")):
        fi, fo = layer_dims[name]
        params[f"fc{i + 1}"] = (
            xavier_uniform(keys[2 * i], fi, fo),
            linear_bias(keys[2 * i + 1], fi, fo),
        )
    return params


# ---------------------------------------------------------------------------
# Pure-JAX references.
# ---------------------------------------------------------------------------
def actor_reference_f32(state, params):
    w1, b1 = params["fc1"]; w2, b2 = params["fc2"]; w3, b3 = params["fc3"]
    h = jnp.maximum(state @ w1 + b1, 0.0)
    h = jnp.maximum(h @ w2 + b2, 0.0)
    return jnp.tanh(h @ w3 + b3)


def actor_reference_bf16(state, params):
    """Mirrors the kernel's bf16-inputs / f32-accumulate precision."""
    w1, b1 = params["fc1"]; w2, b2 = params["fc2"]; w3, b3 = params["fc3"]
    bf = jnp.bfloat16
    h = jnp.maximum(
        jnp.dot(state.astype(bf), w1.astype(bf),
                preferred_element_type=jnp.float32) + b1, 0.0)
    h = jnp.maximum(
        jnp.dot(h.astype(bf), w2.astype(bf),
                preferred_element_type=jnp.float32) + b2, 0.0)
    return jnp.tanh(
        jnp.dot(h.astype(bf), w3.astype(bf),
                preferred_element_type=jnp.float32) + b3)


if __name__ == "__main__":
    key = jax.random.PRNGKey(0)
    k_param, k_state = jax.random.split(key)

    # Small shapes consistent with the module: state_dim=32, hidden=64, action=8.
    layer_dims = {"l1": (32, 64), "l2": (64, 64), "l3": (64, 8)}
    batch = 64

    params = init_actor_params(k_param, layer_dims)
    state = jax.random.normal(k_state, (batch, layer_dims["l1"][0]), jnp.float32)

    # tile_b=16 -> grid=(4,) so the demo actually exercises the pipelined grid.
    out = actor_forward(state, params, tile_b=16)
    out = jax.block_until_ready(out)
    assert out.shape == (batch, layer_dims["l3"][1])

    # Bit-for-precision reference (same bf16 matmul inputs, f32 accumulate).
    ref_bf16 = actor_reference_bf16(state, params)
    assert jnp.allclose(out, ref_bf16, atol=2e-4, rtol=2e-4), "mismatch vs bf16 reference"

    # Sanity check vs the full-f32 forward (looser tolerance due to bf16 inputs).
    ref_f32 = actor_reference_f32(state, params)
    assert jnp.allclose(out, ref_f32, atol=5e-2, rtol=5e-2), "mismatch vs f32 reference"

    print("KERNEL_OK")
</pallas_src>

<mosaic_0001>
module attributes {stable_mosaic.version = 11 : i64} {
  func.func @actor_kernel(%arg0: i32, %arg1: memref<16x128xbf16, #tpu.memory_space<vmem>>, %arg2: memref<128x128xbf16, #tpu.memory_space<vmem>>, %arg3: memref<1x128xf32, #tpu.memory_space<vmem>>, %arg4: memref<128x128xbf16, #tpu.memory_space<vmem>>, %arg5: memref<1x128xf32, #tpu.memory_space<vmem>>, %arg6: memref<128x128xbf16, #tpu.memory_space<vmem>>, %arg7: memref<1x128xf32, #tpu.memory_space<vmem>>, %arg8: memref<16x128xf32, #tpu.memory_space<vmem>>) attributes {dimension_semantics = [#tpu.dimension_semantics<parallel>], iteration_bounds = array<i64: 4>, scalar_prefetch = 0 : i64, scratch_operands = 0 : i64, tpu.core_type = #tpu.core_type<tc>, window_params = [{transform_indices = @transform_0, window_bounds = array<i64: 16, 128>}, {pipeline_mode = #tpu.pipeline_mode<synchronous>, transform_indices = @transform_1, window_bounds = array<i64: 128, 128>}, {pipeline_mode = #tpu.pipeline_mode<synchronous>, transform_indices = @transform_2, window_bounds = array<i64: 1, 128>}, {pipeline_mode = #tpu.pipeline_mode<synchronous>, transform_indices = @transform_3, window_bounds = array<i64: 128, 128>}, {pipeline_mode = #tpu.pipeline_mode<synchronous>, transform_indices = @transform_4, window_bounds = array<i64: 1, 128>}, {pipeline_mode = #tpu.pipeline_mode<synchronous>, transform_indices = @transform_5, window_bounds = array<i64: 128, 128>}, {pipeline_mode = #tpu.pipeline_mode<synchronous>, transform_indices = @transform_6, window_bounds = array<i64: 1, 128>}, {transform_indices = @transform_7, window_bounds = array<i64: 16, 128>}]} {
    %c0 = arith.constant 0 : index
    %c0_0 = arith.constant 0 : index
    %0 = vector.load %arg1[%c0, %c0_0] : memref<16x128xbf16, #tpu.memory_space<vmem>>, vector<16x128xbf16>
    %c0_1 = arith.constant 0 : index
    %c0_2 = arith.constant 0 : index
    %1 = vector.load %arg2[%c0_1, %c0_2] : memref<128x128xbf16, #tpu.memory_space<vmem>>, vector<128x128xbf16>
    %cst = arith.constant dense<0.000000e+00> : vector<16x128xf32>
    %2 = tpu.matmul %0, %1, %cst {dimension_numbers = #tpu.dot_dimension_numbers<[1], [0], [0], [1], [0, 0, 1, 1], [], []>} : vector<16x128xbf16>, vector<128x128xbf16>, vector<16x128xf32> -> vector<16x128xf32>
    %c0_3 = arith.constant 0 : index
    %c0_4 = arith.constant 0 : index
    %3 = vector.load %arg3[%c0_3, %c0_4] : memref<1x128xf32, #tpu.memory_space<vmem>>, vector<1x128xf32>
    %4 = vector.broadcast %3 : vector<1x128xf32> to vector<16x128xf32>
    %5 = arith.addf %2, %4 : vector<16x128xf32>
    %cst_5 = arith.constant 0.000000e+00 : f32
    %6 = vector.broadcast %cst_5 : f32 to vector<16x128xf32>
    %7 = arith.maximumf %5, %6 : vector<16x128xf32>
    %8 = arith.truncf %7 : vector<16x128xf32> to vector<16x128xbf16>
    %c0_6 = arith.constant 0 : index
    %c0_7 = arith.constant 0 : index
    %9 = vector.load %arg4[%c0_6, %c0_7] : memref<128x128xbf16, #tpu.memory_space<vmem>>, vector<128x128xbf16>
    %cst_8 = arith.constant dense<0.000000e+00> : vector<16x128xf32>
    %10 = tpu.matmul %8, %9, %cst_8 {dimension_numbers = #tpu.dot_dimension_numbers<[1], [0], [0], [1], [0, 0, 1, 1], [], []>} : vector<16x128xbf16>, vector<128x128xbf16>, vector<16x128xf32> -> vector<16x128xf32>
    %c0_9 = arith.constant 0 : index
    %c0_10 = arith.constant 0 : index
    %11 = vector.load %arg5[%c0_9, %c0_10] : memref<1x128xf32, #tpu.memory_space<vmem>>, vector<1x128xf32>
    %12 = vector.broadcast %11 : vector<1x128xf32> to vector<16x128xf32>
    %13 = arith.addf %10, %12 : vector<16x128xf32>
    %cst_11 = arith.constant 0.000000e+00 : f32
    %14 = vector.broadcast %cst_11 : f32 to vector<16x128xf32>
    %15 = arith.maximumf %13, %14 : vector<16x128xf32>
    %16 = arith.truncf %15 : vector<16x128xf32> to vector<16x128xbf16>
    %c0_12 = arith.constant 0 : index
    %c0_13 = arith.constant 0 : index
    %17 = vector.load %arg6[%c0_12, %c0_13] : memref<128x128xbf16, #tpu.memory_space<vmem>>, vector<128x128xbf16>
    %cst_14 = arith.constant dense<0.000000e+00> : vector<16x128xf32>
    %18 = tpu.matmul %16, %17, %cst_14 {dimension_numbers = #tpu.dot_dimension_numbers<[1], [0], [0], [1], [0, 0, 1, 1], [], []>} : vector<16x128xbf16>, vector<128x128xbf16>, vector<16x128xf32> -> vector<16x128xf32>
    %c0_15 = arith.constant 0 : index
    %c0_16 = arith.constant 0 : index
    %19 = vector.load %arg7[%c0_15, %c0_16] : memref<1x128xf32, #tpu.memory_space<vmem>>, vector<1x128xf32>
    %20 = vector.broadcast %19 : vector<1x128xf32> to vector<16x128xf32>
    %21 = arith.addf %18, %20 : vector<16x128xf32>
    %22 = math.tanh %21 : vector<16x128xf32>
    %c0_17 = arith.constant 0 : index
    %c0_18 = arith.constant 0 : index
    %23 = vector.load %arg8[%c0_17, %c0_18] : memref<16x128xf32, #tpu.memory_space<vmem>>, vector<16x128xf32>
    tpu.vector_store %arg8[%c0_17, %c0_18], %22 {strides = array<i32>} : memref<16x128xf32, #tpu.memory_space<vmem>>, vector<16x128xf32>,
    return
  }
  func.func @transform_0(%arg0: i32) -> (i32, i32) {
    %c0_i32 = arith.constant 0 : i32
    %c0_i32_0 = arith.constant 0 : i32
    return %arg0, %c0_i32 : i32, i32
  }
  func.func @transform_1(%arg0: i32) -> (i32, i32) {
    %c0_i32 = arith.constant 0 : i32
    %c0_i32_0 = arith.constant 0 : i32
    %c0_i32_1 = arith.constant 0 : i32
    return %c0_i32, %c0_i32_0 : i32, i32
  }
  func.func @transform_2(%arg0: i32) -> (i32, i32) {
    %c0_i32 = arith.constant 0 : i32
    %c0_i32_0 = arith.constant 0 : i32
    %c0_i32_1 = arith.constant 0 : i32
    return %c0_i32, %c0_i32_0 : i32, i32
  }
  func.func @transform_3(%arg0: i32) -> (i32, i32) {
    %c0_i32 = arith.constant 0 : i32
    %c0_i32_0 = arith.constant 0 : i32
    %c0_i32_1 = arith.constant 0 : i32
    return %c0_i32, %c0_i32_0 : i32, i32
  }
  func.func @transform_4(%arg0: i32) -> (i32, i32) {
    %c0_i32 = arith.constant 0 : i32
    %c0_i32_0 = arith.constant 0 : i32
    %c0_i32_1 = arith.constant 0 : i32
    return %c0_i32, %c0_i32_0 : i32, i32
  }
  func.func @transform_5(%arg0: i32) -> (i32, i32) {
    %c0_i32 = arith.constant 0 : i32
    %c0_i32_0 = arith.constant 0 : i32
    %c0_i32_1 = arith.constant 0 : i32
    return %c0_i32, %c0_i32_0 : i32, i32
  }
  func.func @transform_6(%arg0: i32) -> (i32, i32) {
    %c0_i32 = arith.constant 0 : i32
    %c0_i32_0 = arith.constant 0 : i32
    %c0_i32_1 = arith.constant 0 : i32
    return %c0_i32, %c0_i32_0 : i32, i32
  }
  func.func @transform_7(%arg0: i32) -> (i32, i32) {
    %c0_i32 = arith.constant 0 : i32
    %c0_i32_0 = arith.constant 0 : i32
    return %arg0, %c0_i32 : i32, i32
  }
}

</mosaic_0001>

<bundles_post_ra>
// kernel: actor_forward.1
= control target key start
LH: loop header
LB: loop body
LE: loop exit
PB: predicated region body
PF: predicated region fallthrough
CT: control target
= control target key end

     0   :  { %s908_s24 = smov 0   ;;  %s1043_s0 = inlined_call_operand.vmem [shape: bf16[64,128], index: 0, kind: input, shape index: {}]   ;;  %s1044_s1 = inlined_call_operand.vmem [shape: bf16[128,128], index: 1, kind: input, shape index: {}]   ;;  %s1045_s2 = inlined_call_operand.vmem [shape: f32[1,128], index: 2, kind: input, shape index: {}]   ;;  %s1046_s3 = inlined_call_operand.vmem [shape: bf16[128,128], index: 3, kind: input, shape index: {}]   ;;  %s1047_s4 = inlined_call_operand.vmem [shape: f32[1,128], index: 4, kind: input, shape index: {}]   ;;  %s1048_s5 = inlined_call_operand.vmem [shape: bf16[128,128], index: 5, kind: input, shape index: {}]   ;;  %s1049_s6 = inlined_call_operand.vmem [shape: f32[1,128], index: 6, kind: input, shape index: {}]   ;;  %s1050_s7 = inlined_call_operand.vmem [shape: f32[64,128], index: 7, kind: output, shape index: {}]  }
   0x1 LB: > { %s693_s25 = sadd.s32 4294967295, %s864_s24   ;;  %p697_p0 = scmp.ge.s32.totalorder %s864_s24, 1  ;;  %s864_s24 = sphi %s908_s24, %s17_s24  }
   0x2   : > { %p238_p1 = scmp.lt.s32.totalorder %s864_s24, 5 }
   0x4   : > { %p239_p2 = pnand %p697_p0, %p238_p1 }
   0x5   : > { %v829_v0 = vld [vmem:[%s1044_s1] sm:$0xff] (!%p239_p2)   ;;  %v866_v1 = vmov (!%p239_p2), 0.0   ;;  %v830_v2 = vld [vmem:[%s1044_s1 + $0x8] sm:$0xff] (!%p239_p2)   ;;  %vm867_vm0 = vmmov (!%p239_p2), 0   ;;  %s698_s30 = sshll.u32 (!%p239_p2), %s693_s25, 1  ;;  %v831_v3 = vld [vmem:[%s1044_s1 + $0x10] sm:$0xff] (!%p239_p2)  }
   0x6   : > { %242 = sbr.rel (%p239_p2) target bundleno = 706 (0x2c2), region = 48  ;;  %759 = vmatprep.subr.bf16.mxu0 (!%p239_p2), %v866_v1  ;;  %779 = vmatprep.subr.bf16.mxu1 (!%p239_p2), %v866_v1  ;;  %p271_p3 = scmp.lt.s32.totalorder (!%p239_p2), %s698_s30, 7  ;;  %v838_v4 = vld [vmem:[%s1046_s3] sm:$0xff] (!%p239_p2)   ;;  %v832_v5 = vld [vmem:[%s1044_s1 + $0x18] sm:$0xff] (!%p239_p2)   ;;  %v839_v6 = vld [vmem:[%s1046_s3 + $0x8] sm:$0xff] (!%p239_p2)  }
   0x7   : > { %760 = vmatpush3.bf16.msra.mxu0 (!%p239_p2), %v829_v0  ;;  %775 = vmatprep.mubr.msk.bf16.mxu0 (!%p239_p2), %vm867_vm0, %v866_v1  ;;  %v833_v7 = vld [vmem:[%s1044_s1 + $0x20] sm:$0xff] (!%p239_p2)   ;;  %v840_v8 = vld [vmem:[%s1046_s3 + $0x10] sm:$0xff] (!%p239_p2)   ;;  %v834_v9 = vld [vmem:[%s1044_s1 + $0x28] sm:$0xff] (!%p239_p2)  }
   0x8   : > { %761 = vmatprep.subr.bf16.mxu0 (!%p239_p2), %v866_v1  ;;  %795 = vmatprep.mubr.msk.bf16.mxu1 (!%p239_p2), %vm867_vm0, %v866_v1  ;;  %v841_v10 = vld [vmem:[%s1046_s3 + $0x18] sm:$0xff] (!%p239_p2)   ;;  %v835_v11 = vld [vmem:[%s1044_s1 + $0x30] sm:$0xff] (!%p239_p2)   ;;  %v842_v12 = vld [vmem:[%s1046_s3 + $0x20] sm:$0xff] (!%p239_p2)  }
   0x9   : > { %780 = vmatpush3.bf16.msra.mxu1 (!%p239_p2), %v838_v4  ;;  %v836_v13 = vld [vmem:[%s1044_s1 + $0x38] sm:$0xff] (!%p239_p2)   ;;  %v843_v14 = vld [vmem:[%s1046_s3 + $0x28] sm:$0xff] (!%p239_p2)   ;;  %v844_v16 = vld [vmem:[%s1046_s3 + $0x30] sm:$0xff] (!%p239_p2)  }
   0xa   : > { %781 = vmatprep.subr.bf16.mxu1 (!%p239_p2), %v866_v1  ;;  %v845_v17 = vld [vmem:[%s1046_s3 + $0x38] sm:$0xff] (!%p239_p2)   ;;  %v846_v18 = vld [vmem:[%s1048_s5] sm:$0xff] (!%p239_p2)   ;;  %v847_v19 = vld [vmem:[%s1048_s5 + $0x8] sm:$0xff] (!%p239_p2)  }
   0xb   : > { %762 = vmatpush3.bf16.msra.mxu0 (!%p239_p2), %v830_v2  ;;  %v848_v20 = vld [vmem:[%s1048_s5 + $0x10] sm:$0xff] (!%p239_p2)   ;;  %v849_v21 = vld [vmem:[%s1048_s5 + $0x18] sm:$0xff] (!%p239_p2)   ;;  %v850_v22 = vld [vmem:[%s1048_s5 + $0x20] sm:$0xff] (!%p239_p2)  }
   0xc   : > { %763 = vmatprep.subr.bf16.mxu0 (!%p239_p2), %v866_v1  ;;  %v851_v23 = vld [vmem:[%s1048_s5 + $0x28] sm:$0xff] (!%p239_p2)   ;;  %v702_v24 = vld [vmem:[%s1045_s2] ss:$0 sm:$0xff] (!%p239_p2)  ;;  %v852_v34 = vld [vmem:[%s1048_s5 + $0x30] sm:$0xff] (!%p239_p2)  }
   0xd   : > { %s1052_s30 = smov (!%p271_p3, %s698_s30), 7  ;;  %782 = vmatpush3.bf16.msra.mxu1 %v839_v6  ;;  %v853_v35 = vld [vmem:[%s1048_s5 + $0x38] sm:$0xff]   ;;  %v712_v36 = vld [vmem:[%s1047_s4] ss:$0 sm:$0xff] }
   0xe   : > { %s699_s10 = sshll.u32 %s1052_s30, 2  ;;  %783 = vmatprep.subr.bf16.mxu1 %v866_v1  ;;  %v721_v46 = vld [vmem:[%s1049_s6] ss:$0 sm:$0xff]  ;;  %s701_s20 = sshll.u32 %s1052_s30, 3 }
   0xf   : > { %s939_s13 = scalar_lea.vmem %s1043_s0, %s699_s10  ;;  %764 = vmatpush3.bf16.msra.mxu0 %v831_v3  ;;  %s280_s23 = scalar_lea.vmem %s1050_s7, %s701_s20 }
  0x10   : > { %765 = vmatprep.subr.bf16.mxu0 %v866_v1  ;;  %v837_v15 = vld [vmem:[%s939_s13] sm:$0xff]  }
  0x11   : > { %784 = vmatpush3.bf16.msra.mxu1 %v840_v8 }
  0x12   : > { %785 = vmatprep.subr.bf16.mxu1 %v866_v1 }
  0x13   : > { %766 = vmatpush3.bf16.msra.mxu0 %v832_v5 }
  0x14   : > { %767 = vmatprep.subr.bf16.mxu0 %v866_v1 }
  0x15   : > { %786 = vmatpush3.bf16.msra.mxu1 %v841_v10 }
  0x16   : > { %787 = vmatprep.subr.bf16.mxu1 %v866_v1 }
  0x17   : > { %768 = vmatpush3.bf16.msra.mxu0 %v833_v7 }
  0x18   : > { %769 = vmatprep.subr.bf16.mxu0 %v866_v1 }
  0x19   : > { %788 = vmatpush3.bf16.msra.mxu1 %v842_v12 }
  0x1a   : > { %789 = vmatprep.subr.bf16.mxu1 %v866_v1 }
  0x1b   : > { %770 = vmatpush3.bf16.msra.mxu0 %v834_v9 }
  0x1c   : > { %771 = vmatprep.subr.bf16.mxu0 %v866_v1 }
  0x1d   : > { %790 = vmatpush3.bf16.msra.mxu1 %v843_v14 }
  0x1e   : > { %791 = vmatprep.subr.bf16.mxu1 %v866_v1 }
  0x1f   : > { %772 = vmatpush3.bf16.msra.mxu0 %v835_v11 }
  0x20   : > { %773 = vmatprep.subr.bf16.mxu0 %v866_v1 }
  0x21   : > { %792 = vmatpush3.bf16.msra.mxu1 %v844_v16 }
  0x22   : > { %793 = vmatprep.subr.bf16.mxu1 %v866_v1 }
  0x23   : > { %774 = vmatpush3.bf16.msra.mxu0 %v836_v13 }
  0x24   : > { %799 = vmatprep.subr.bf16.mxu0 %v866_v1 }
  0x25   : > { %794 = vmatpush3.bf16.msra.mxu1 %v845_v17 }
  0x26   : > { %776 = vmatmul.mubr.bf16.vlgmr.msra.gmra.mrb[0].mxu0 %v837_v15 }
  0x27   : > { %815 = vmatprep.mubr.msk.bf16.mxu0 %vm867_vm0, %v866_v1  ;;  %800 = vmatpush3.bf16.msra.mxu0 %v846_v18 }
  0x28   : > { %801 = vmatprep.subr.bf16.mxu0 %v866_v1 }
  0x2b   : > { %802 = vmatpush3.bf16.msra.mxu0 %v847_v19 }
  0x2c   : > { %803 = vmatprep.subr.bf16.mxu0 %v866_v1 }
  0x2f   : > { %804 = vmatpush3.bf16.msra.mxu0 %v848_v20 }
  0x30   : > { %805 = vmatprep.subr.bf16.mxu0 %v866_v1 }
  0x33   : > { %806 = vmatpush3.bf16.msra.mxu0 %v849_v21 }
  0x34   : > { %807 = vmatprep.subr.bf16.mxu0 %v866_v1 }
  0x37   : > { %808 = vmatpush3.bf16.msra.mxu0 %v850_v22 }
  0x38   : > { %809 = vmatprep.subr.bf16.mxu0 %v866_v1 }
  0x3b   : > { %810 = vmatpush3.bf16.msra.mxu0 %v851_v23 }
  0x3c   : > { %811 = vmatprep.subr.bf16.mxu0 %v866_v1 }
  0x3f   : > { %812 = vmatpush3.bf16.msra.mxu0 %v852_v34 }
  0x40   : > { %813 = vmatprep.subr.bf16.mxu0 %v866_v1 }
  0x43   : > { %814 = vmatpush3.bf16.msra.mxu0 %v853_v35 }
  0xf9   : > { %v396_v25 = vpop.f32.mrb[0].mxu0 }
  0xfa   : > { %v397_v26 = vadd.f32 %v702_v24, %v396_v25  ;;  %v777_v27 = vpop.f32.mrb[1].mxu0 }
  0xfb   : > { %v399_v28 = vpop.f32.mrb[2].mxu0 }
  0xfc   : > { %v400_v29 = vadd.f32 %v702_v24, %v399_v28  ;;  %v778_v30 = vpop.f32.mrb[3].mxu0  ;;  %v403_v31 = vmax.f32 %v397_v26, 0.0 }
  0xfe   : > { %v404_v32 = vmax.f32 %v400_v29, 0.0 }
 0x100   : > { %v405_v33 = vpack.c.bf16 %v404_v32, %v403_v31 }
 0x102   : > { %796 = vmatmul.mubr.bf16.vlgmr.msra.gmra.mrb[0].mxu1 %v405_v33 }
 0x1d5   : > { %v511_v37 = vpop.f32.mrb[0].mxu1 }
 0x1d6   : > { %v512_v38 = vadd.f32 %v712_v36, %v511_v37  ;;  %v797_v39 = vpop.f32.mrb[1].mxu1 }
 0x1d7   : > { %v514_v40 = vpop.f32.mrb[2].mxu1 }
 0x1d8   : > { %v515_v41 = vadd.f32 %v712_v36, %v514_v40  ;;  %v798_v42 = vpop.f32.mrb[3].mxu1  ;;  %v518_v43 = vmax.f32 %v512_v38, 0.0 }
 0x1da   : > { %v519_v44 = vmax.f32 %v515_v41, 0.0 }
 0x1dc   : > { %v520_v45 = vpack.c.bf16 %v519_v44, %v518_v43 }
 0x1de   : > { %816 = vmatmul.mubr.bf16.vlgmr.msra.gmra.mrb[4].mxu0 %v520_v45 }
 0x2b1   : > { %v626_v47 = vpop.f32.mrb[4].mxu0 }
 0x2b2   : > { %v627_v48 = vadd.f32 %v721_v46, %v626_v47  ;;  %v817_v49 = vpop.f32.mrb[5].mxu0 }
 0x2b3   : > { %v629_v50 = vpop.f32.mrb[6].mxu0 }
 0x2b4   : > { %854 = vtanh.f32 %v627_v48  ;;  %v630_v51 = vadd.f32 %v721_v46, %v629_v50  ;;  %v818_v52 = vpop.f32.mrb[7].mxu0 }
 0x2b6   : > { %856 = vtanh.f32 %v630_v51 }
 0x2be   : > { %v855_v53 = vpop.eup %854 }
 0x2bf   : > { %635 = vst [vmem:[%s280_s23] sm:$0xff] %v855_v53 }
 0x2c0   : > { %v857_v54 = vpop.eup %856 }
 0x2c1   : > { %636 = vst [vmem:[%s280_s23 + $0x8] sm:$0xff] %v857_v54 }
 0x2c2 PF: > { %s17_s24 = sadd.s32 1, %s864_s24  }
 0x2c3   : > { %p14_p4 = scmp.ge.s32.totalorder %s17_s24, 6  }
 0x2c5   :  { %16 = sbr.rel (!%p14_p4) target bundleno = 1 (0x1), region = 78 }

</bundles_post_ra>
